<compile_context>
chip_gen: v5e
topology: v5e:2x2
jax: 0.10.0
libtpu: 0.0.40
codegen_flags: <defaults>
</compile_context>

<pallas_src>
import functools

import jax
import jax.numpy as jnp
from jax.experimental import pallas as pl
from jax.experimental.pallas import tpu as pltpu


def _round_up(x, m):
    return ((x + m - 1) // m) * m


def _divisor_tile(dim, pref):
    """Largest multiple of 128 that is <= pref and divides dim (dim % 128 == 0)."""
    t = max(128, min(pref, dim) - (min(pref, dim) % 128))
    while dim % t:
        t -= 128
    return t


def _vmem_plan():
    """Generation-aware (VMEM limit, tiling budget, tm cap, #TensorCores)."""
    cap = 128 * 1024 * 1024
    cores = 1
    try:
        info = pltpu.get_tpu_info()
        cap = int(getattr(info, "vmem_capacity_bytes", cap))
        for attr in ("num_tensorcores", "tensorcores_per_chip", "num_cores"):
            v = getattr(info, attr, None)
            if isinstance(v, int) and v > 0:
                cores = v
                break
    except Exception:
        pass
    if cap <= 80 * 1024 * 1024:
        # v7x-class: 64 MiB VMEM per TensorCore, 2 TCs per chip.
        return 52 * 1024 * 1024, 44 * 1024 * 1024, 512, max(cores, 2)
    # v5e / v6e: 128 MiB VMEM, single TensorCore.
    return 100 * 1024 * 1024, 90 * 1024 * 1024, 1024, cores


# ----------------------------------------------------------------------------
# Fused whole-MLP kernel (weights resident in VMEM, activations stay in vregs)
# ----------------------------------------------------------------------------
def _mlp_fused_kernel(*refs, num_layers, compute_dtype):
    """refs = (x_ref, w0_ref, b0_ref, ..., w_{n-1}_ref, b_{n-1}_ref, o_ref)."""
    x_ref = refs[0]
    o_ref = refs[1 + 2 * num_layers]
    h = x_ref[...].astype(compute_dtype)
    for l in range(num_layers):
        w_ref = refs[1 + 2 * l]
        b_ref = refs[2 + 2 * l]                       # (1, d_pad) f32
        acc = jnp.dot(h, w_ref[...], preferred_element_type=jnp.float32)
        acc = acc + b_ref[...]                        # bias in f32
        if l != num_layers - 1:
            acc = jnp.maximum(acc, 0.0)               # ReLU in f32 (v5e-safe)
            h = acc.astype(compute_dtype)
        else:
            o_ref[...] = acc.astype(o_ref.dtype)


def _pick_tm(batch, d_in_pad, dims_pad, *, w_itemsize, budget_bytes, tm_cap, mult):
    """Largest row tile whose working set fits the VMEM budget.

    Weights/biases are single-buffered (pl.Buffered(1)); x/out are
    double-buffered by the pipeline; intermediate h kept in f32.
    """
    prev = d_in_pad
    wb_bytes = 0
    for d in dims_pad:
        wb_bytes += w_itemsize * prev * d + 4 * d
        prev = d
    max_d = max([d_in_pad] + dims_pad)

    tm = _round_up(min(_round_up(batch, mult), tm_cap), mult)
    while tm > mult:
        act_bytes = 2 * 4 * tm * (d_in_pad + dims_pad[-1])   # x / out double-buffered
        live_bytes = 2 * 4 * tm * max_d                      # f32 intermediate headroom
        if wb_bytes + act_bytes + live_bytes <= budget_bytes:
            break
        tm = max(mult, _round_up(tm // 2, mult))
    return tm, wb_bytes


# ----------------------------------------------------------------------------
# Fallback: single Linear(+bias[+ReLU]) as a K-tiled matmul (for huge layers)
# ----------------------------------------------------------------------------
def _linear_tiled_kernel(x_ref, w_ref, b_ref, o_ref, acc_ref, *, relu, compute_dtype):
    k = pl.program_id(2)

    @pl.when(k == 0)
    def _():
        acc_ref[...] = jnp.zeros_like(acc_ref)

    acc_ref[...] += jnp.dot(x_ref[...].astype(compute_dtype), w_ref[...],
                            preferred_element_type=jnp.float32)

    @pl.when(k == pl.num_programs(2) - 1)
    def _():
        r = acc_ref[...] + b_ref[...]
        if relu:
            r = jnp.maximum(r, 0.0)
        o_ref[...] = r.astype(o_ref.dtype)


def _linear_tiled(x, w_pad, b_pad, *, relu, compute_dtype, vmem_limit):
    M, K = x.shape
    _, N = w_pad.shape
    mult = 16 if jnp.dtype(compute_dtype) == jnp.dtype(jnp.bfloat16) else 8
    tm = min(256, _round_up(M, mult))
    M_pad = _round_up(M, tm)
    if M_pad != M:
        x = jnp.zeros((M_pad, K), x.dtype).at[:M].set(x)
    tn = _divisor_tile(N, 512)
    tk = _divisor_tile(K, 512)

    out = pl.pallas_call(
        functools.partial(_linear_tiled_kernel, relu=relu, compute_dtype=compute_dtype),
        out_shape=jax.ShapeDtypeStruct((M_pad, N), jnp.float32),
        grid=(M_pad // tm, N // tn, K // tk),
        in_specs=[pl.BlockSpec((tm, tk), lambda i, j, k: (i, k)),
                  pl.BlockSpec((tk, tn), lambda i, j, k: (k, j)),
                  pl.BlockSpec((1, tn), lambda i, j, k: (0, j))],
        out_specs=pl.BlockSpec((tm, tn), lambda i, j, k: (i, j)),
        scratch_shapes=[pltpu.VMEM((tm, tn), jnp.float32)],
        compiler_params=pltpu.CompilerParams(
            dimension_semantics=("parallel", "parallel", "arbitrary"),
            vmem_limit_bytes=vmem_limit),
        cost_estimate=pl.CostEstimate(
            flops=2 * M_pad * K * N, transcendentals=0,
            bytes_accessed=4 * M_pad * (K + N) + w_pad.dtype.itemsize * K * N + 4 * N),
    )(x, w_pad, b_pad)
    return out[:M] if M_pad != M else out


# ----------------------------------------------------------------------------
# Wrapper API
# ----------------------------------------------------------------------------
def prepare_params(params, compute_dtype=jnp.bfloat16):
    """Pad (to lane multiples of 128) and cast the weights ONCE, outside the
    forward path, so per-call HBM padding traffic disappears."""
    compute_dtype = jnp.dtype(compute_dtype)
    d_in = params[0][0].shape[0]
    dims = [w.shape[1] for (w, _) in params]
    d_in_pad = _round_up(d_in, 128)
    dims_pad = [_round_up(d, 128) for d in dims]

    w_pads, b_pads = [], []
    prev_pad, prev_raw = d_in_pad, d_in
    for (w, b), d_pad in zip(params, dims_pad):
        d = w.shape[1]
        w_p = jnp.zeros((prev_pad, d_pad), compute_dtype).at[:prev_raw, :d].set(
            w.astype(compute_dtype))
        b_p = jnp.zeros((1, d_pad), jnp.float32).at[0, :d].set(b.astype(jnp.float32))
        w_pads.append(w_p)
        b_pads.append(b_p)
        prev_pad, prev_raw = d_pad, d
    return dict(w=w_pads, b=b_pads, d_in=d_in, d_in_pad=d_in_pad,
                dims=dims, dims_pad=dims_pad, compute_dtype=compute_dtype)


def mlp_forward(prepared, x, *, tm=None, force_fallback=False):
    """Forward of the whole MLP: Linear -> ReLU -> ... -> Linear."""
    B, d_in = x.shape
    assert d_in == prepared["d_in"]
    compute_dtype = prepared["compute_dtype"]
    w_pads, b_pads = prepared["w"], prepared["b"]
    d_in_pad = prepared["d_in_pad"]
    dims, dims_pad = prepared["dims"], prepared["dims_pad"]
    num_layers = len(w_pads)
    d_last, d_last_pad = dims[-1], dims_pad[-1]

    vmem_limit, budget, tm_cap, num_cores = _vmem_plan()
    mult = 16 if compute_dtype == jnp.dtype(jnp.bfloat16) else 8
    user_tm = tm is not None

    picked_tm, wb_bytes = _pick_tm(B, d_in_pad, dims_pad,
                                   w_itemsize=compute_dtype.itemsize,
                                   budget_bytes=budget, tm_cap=tm_cap, mult=mult)
    if user_tm:
        picked_tm = tm
    tm = max(mult, _round_up(min(picked_tm, _round_up(B, mult)), mult))

    # If even the smallest row tile cannot coexist with the resident weights,
    # run each layer as its own K-tiled matmul instead.
    max_d = max([d_in_pad] + dims_pad)
    min_act = 2 * 4 * mult * (d_in_pad + d_last_pad) + 2 * 4 * mult * max_d
    if force_fallback or (wb_bytes + min_act > budget):
        h = x.astype(jnp.float32)
        if d_in_pad != d_in:
            h = jnp.zeros((B, d_in_pad), jnp.float32).at[:, :d_in].set(h)
        for l in range(num_layers):
            h = _linear_tiled(h, w_pads[l], b_pads[l],
                              relu=(l != num_layers - 1),
                              compute_dtype=compute_dtype,
                              vmem_limit=vmem_limit)
        return h[:, :d_last].astype(x.dtype)

    # Multi-TensorCore chips (v7x): make sure the "parallel" axis has >= 2 tiles.
    B_al = _round_up(B, mult)
    if (not user_tm) and num_cores >= 2 and tm >= B_al and B_al >= 2 * mult:
        tm = _round_up(B_al // 2, mult)
    B_pad = _round_up(B, tm)

    if B_pad == B and d_in_pad == d_in:
        x_p = x
    else:
        x_p = jnp.zeros((B_pad, d_in_pad), x.dtype).at[:B, :d_in].set(x)

    inputs = [x_p]
    in_specs = [pl.BlockSpec((tm, d_in_pad), lambda i: (i, 0))]
    prev_pad = d_in_pad
    flops = 0
    for w_p, b_p, d_pad in zip(w_pads, b_pads, dims_pad):
        inputs += [w_p, b_p]
        # Constant index_map + single buffer: weights stay resident across tiles.
        in_specs += [
            pl.BlockSpec((prev_pad, d_pad), lambda i: (0, 0),
                         pipeline_mode=pl.Buffered(1)),
            pl.BlockSpec((1, d_pad), lambda i: (0, 0),
                         pipeline_mode=pl.Buffered(1)),
        ]
        flops += 2 * B_pad * prev_pad * d_pad
        prev_pad = d_pad

    bytes_accessed = 4 * B_pad * (d_in_pad + d_last_pad) + wb_bytes

    out_padded = pl.pallas_call(
        functools.partial(_mlp_fused_kernel,
                          num_layers=num_layers, compute_dtype=compute_dtype),
        out_shape=jax.ShapeDtypeStruct((B_pad, d_last_pad), x.dtype),
        grid=(B_pad // tm,),
        in_specs=in_specs,
        out_specs=pl.BlockSpec((tm, d_last_pad), lambda i: (i, 0)),
        compiler_params=pltpu.CompilerParams(
            dimension_semantics=("parallel",),         # megacore splits row tiles
            vmem_limit_bytes=vmem_limit),
        cost_estimate=pl.CostEstimate(
            flops=flops, transcendentals=0, bytes_accessed=bytes_accessed),
    )(*inputs)

    if B_pad == B and d_last_pad == d_last:
        return out_padded
    return out_padded[:B, :d_last]


def init_linear_layer_params(key, input_dim, dims):
    """Xavier-normal weights (gain=1.0), zero biases; stored as (in, out)."""
    params = []
    d_in = input_dim
    for d_out in dims:
        key, sub = jax.random.split(key)
        std = (2.0 / (d_in + d_out)) ** 0.5
        w_torch = jax.random.normal(sub, (d_out, d_in), dtype=jnp.float32) * std
        params.append((w_torch.T, jnp.zeros((d_out,), dtype=jnp.float32)))
        d_in = d_out
    return params


def linear_layer_forward(params, x, *, compute_dtype=jnp.bfloat16, **kwargs):
    """LinearLayer.forward with the default config (Relu, no BN/dropout/sigmoid)."""
    prepared = prepare_params(params, compute_dtype=compute_dtype)
    return mlp_forward(prepared, x, **kwargs)
    # TODO(synk): batch_norm / dropout / sigmoid branches are disabled in the
    # default config (sigmoid=True hits the undefined self.output_layer in the
    # reference PyTorch anyway) and are not implemented here.


def _reference_forward(params, x):
    h = x
    for idx, (w, b) in enumerate(params):
        h = h @ w + b
        if idx != len(params) - 1:
            h = jnp.maximum(h, 0.0)
    return h


if __name__ == "__main__":
    key = jax.random.PRNGKey(0)
    k_param, k_x, k_x2 = jax.random.split(key, 3)

    batch = 8
    input_dim = 32
    dims = (64, 16)   # two Linear layers with a ReLU in between

    params = init_linear_layer_params(k_param, input_dim, dims)
    x = jax.random.normal(k_x, (batch, input_dim), dtype=jnp.float32)
    ref = _reference_forward(params, x)

    # 1) Exact f32-compute path (tight tolerance).
    prepared_f32 = prepare_params(params, compute_dtype=jnp.float32)
    out = jax.block_until_ready(mlp_forward(prepared_f32, x))
    assert out.shape == (batch, dims[-1])
    assert jnp.allclose(out, ref, atol=1e-5, rtol=1e-5)

    # 2) Default bf16 MXU path (f32 accumulate), multi-tile grid + batch padding.
    prepared_bf16 = prepare_params(params)           # compute_dtype=bfloat16
    batch2 = 136
    x2 = jax.random.normal(k_x2, (batch2, input_dim), dtype=jnp.float32)
    ref2 = _reference_forward(params, x2)
    out2 = jax.block_until_ready(mlp_forward(prepared_bf16, x2, tm=64))
    assert out2.shape == (batch2, dims[-1])
    assert jnp.allclose(out2, ref2, atol=5e-2, rtol=5e-2)

    # 3) Large-model fallback (per-layer K-tiled matmul), forced here to verify it.
    out3 = jax.block_until_ready(mlp_forward(prepared_bf16, x2, force_fallback=True))
    assert out3.shape == (batch2, dims[-1])
    assert jnp.allclose(out3, ref2, atol=5e-2, rtol=5e-2)

    print("KERNEL_OK")
</pallas_src>

<mosaic_0001>
module attributes {stable_mosaic.version = 11 : i64} {
  func.func @_mlp_fused_kernel(%arg0: i32, %arg1: memref<8x128xf32, #tpu.memory_space<vmem>>, %arg2: memref<128x128xf32, #tpu.memory_space<vmem>>, %arg3: memref<1x128xf32, #tpu.memory_space<vmem>>, %arg4: memref<128x128xf32, #tpu.memory_space<vmem>>, %arg5: memref<1x128xf32, #tpu.memory_space<vmem>>, %arg6: memref<8x128xf32, #tpu.memory_space<vmem>>) attributes {dimension_semantics = [#tpu.dimension_semantics<parallel>], iteration_bounds = array<i64: 1>, scalar_prefetch = 0 : i64, scratch_operands = 0 : i64, tpu.core_type = #tpu.core_type<tc>, window_params = [{transform_indices = @transform_0, window_bounds = array<i64: 8, 128>}, {pipeline_mode = #tpu.pipeline_mode<synchronous>, transform_indices = @transform_1, window_bounds = array<i64: 128, 128>}, {pipeline_mode = #tpu.pipeline_mode<synchronous>, transform_indices = @transform_2, window_bounds = array<i64: 1, 128>}, {pipeline_mode = #tpu.pipeline_mode<synchronous>, transform_indices = @transform_3, window_bounds = array<i64: 128, 128>}, {pipeline_mode = #tpu.pipeline_mode<synchronous>, transform_indices = @transform_4, window_bounds = array<i64: 1, 128>}, {transform_indices = @transform_5, window_bounds = array<i64: 8, 128>}]} {
    %c0 = arith.constant 0 : index
    %c0_0 = arith.constant 0 : index
    %0 = vector.load %arg1[%c0, %c0_0] : memref<8x128xf32, #tpu.memory_space<vmem>>, vector<8x128xf32>
    %c0_1 = arith.constant 0 : index
    %c0_2 = arith.constant 0 : index
    %1 = vector.load %arg2[%c0_1, %c0_2] : memref<128x128xf32, #tpu.memory_space<vmem>>, vector<128x128xf32>
    %cst = arith.constant dense<0.000000e+00> : vector<8x128xf32>
    %2 = tpu.matmul %0, %1, %cst {dimension_numbers = #tpu.dot_dimension_numbers<[1], [0], [0], [1], [0, 0, 1, 1], [], []>} : vector<8x128xf32>, vector<128x128xf32>, vector<8x128xf32> -> vector<8x128xf32>
    %c0_3 = arith.constant 0 : index
    %c0_4 = arith.constant 0 : index
    %3 = vector.load %arg3[%c0_3, %c0_4] : memref<1x128xf32, #tpu.memory_space<vmem>>, vector<1x128xf32>
    %4 = vector.broadcast %3 : vector<1x128xf32> to vector<8x128xf32>
    %5 = arith.addf %2, %4 : vector<8x128xf32>
    %cst_5 = arith.constant 0.000000e+00 : f32
    %6 = vector.broadcast %cst_5 : f32 to vector<8x128xf32>
    %7 = arith.maximumf %5, %6 : vector<8x128xf32>
    %c0_6 = arith.constant 0 : index
    %c0_7 = arith.constant 0 : index
    %8 = vector.load %arg4[%c0_6, %c0_7] : memref<128x128xf32, #tpu.memory_space<vmem>>, vector<128x128xf32>
    %cst_8 = arith.constant dense<0.000000e+00> : vector<8x128xf32>
    %9 = tpu.matmul %7, %8, %cst_8 {dimension_numbers = #tpu.dot_dimension_numbers<[1], [0], [0], [1], [0, 0, 1, 1], [], []>} : vector<8x128xf32>, vector<128x128xf32>, vector<8x128xf32> -> vector<8x128xf32>
    %c0_9 = arith.constant 0 : index
    %c0_10 = arith.constant 0 : index
    %10 = vector.load %arg5[%c0_9, %c0_10] : memref<1x128xf32, #tpu.memory_space<vmem>>, vector<1x128xf32>
    %11 = vector.broadcast %10 : vector<1x128xf32> to vector<8x128xf32>
    %12 = arith.addf %9, %11 : vector<8x128xf32>
    %c0_11 = arith.constant 0 : index
    %c0_12 = arith.constant 0 : index
    %13 = vector.load %arg6[%c0_11, %c0_12] : memref<8x128xf32, #tpu.memory_space<vmem>>, vector<8x128xf32>
    tpu.vector_store %arg6[%c0_11, %c0_12], %12 {strides = array<i32>} : memref<8x128xf32, #tpu.memory_space<vmem>>, vector<8x128xf32>,
    return
  }
  func.func @transform_0(%arg0: i32) -> (i32, i32) {
    %c0_i32 = arith.constant 0 : i32
    %c0_i32_0 = arith.constant 0 : i32
    return %arg0, %c0_i32 : i32, i32
  }
  func.func @transform_1(%arg0: i32) -> (i32, i32) {
    %c0_i32 = arith.constant 0 : i32
    %c0_i32_0 = arith.constant 0 : i32
    %c0_i32_1 = arith.constant 0 : i32
    return %c0_i32, %c0_i32_0 : i32, i32
  }
  func.func @transform_2(%arg0: i32) -> (i32, i32) {
    %c0_i32 = arith.constant 0 : i32
    %c0_i32_0 = arith.constant 0 : i32
    %c0_i32_1 = arith.constant 0 : i32
    return %c0_i32, %c0_i32_0 : i32, i32
  }
  func.func @transform_3(%arg0: i32) -> (i32, i32) {
    %c0_i32 = arith.constant 0 : i32
    %c0_i32_0 = arith.constant 0 : i32
    %c0_i32_1 = arith.constant 0 : i32
    return %c0_i32, %c0_i32_0 : i32, i32
  }
  func.func @transform_4(%arg0: i32) -> (i32, i32) {
    %c0_i32 = arith.constant 0 : i32
    %c0_i32_0 = arith.constant 0 : i32
    %c0_i32_1 = arith.constant 0 : i32
    return %c0_i32, %c0_i32_0 : i32, i32
  }
  func.func @transform_5(%arg0: i32) -> (i32, i32) {
    %c0_i32 = arith.constant 0 : i32
    %c0_i32_0 = arith.constant 0 : i32
    return %arg0, %c0_i32 : i32, i32
  }
}

</mosaic_0001>

<bundles_post_ra>
// kernel: tpu_custom_call.1
= control target key start
LH: loop header
LB: loop body
LE: loop exit
PB: predicated region body
PF: predicated region fallthrough
CT: control target
= control target key end

     0   :  { %10 = vsyncpa [#allocation3], 0  ;;  %s331_s0 = inlined_call_operand.hbm [shape: f32[8,128], index: 0, kind: input, shape index: {}]   ;;  %s332_s1 = inlined_call_operand.hbm [shape: f32[128,128], index: 1, kind: input, shape index: {}]   ;;  %s333_s2 = inlined_call_operand.vmem [shape: f32[1,128], index: 2, kind: input, shape index: {}]   ;;  %s334_s3 = inlined_call_operand.hbm [shape: f32[128,128], index: 3, kind: input, shape index: {}]   ;;  %s335_s4 = inlined_call_operand.vmem [shape: f32[1,128], index: 4, kind: input, shape index: {}]   ;;  %s336_s5 = inlined_call_operand.hbm [shape: f32[8,128], index: 5, kind: output, shape index: {}]  }
   0x1   :  { %11 = vsyncpa [#allocation6], 0  ;;  %s28_s20 = sshll.u32 %s332_s1, 4  ;;  %s29_s20 = int_to_ptr.hbm [resolvable:$true] %s28_s20 }
   0x2   :  { %12 = vsyncpa [#allocation4], 0  ;;  %s277_s21 = smov [#allocation5]   ;;  %s18_s25 = sshll.u32 %s331_s0, 4  ;;  %s19_s25 = int_to_ptr.hbm [resolvable:$true] %s18_s25 }
   0x3   :  { %s30_s22 = sshll.u32 %s277_s21, 4  ;;  %s278_s26 = smov 128   ;;  %s31_s22 = int_to_ptr.vmem [resolvable:$true] %s30_s22 }
   0x4   :  { %s279_s27 = smov 8   ;;  %s280_s28 = smov [#allocation2]  }
   0x5   :  { %36 = dma.hbm_to_vmem [thread:$0]  %s29_s20, 2048, %s31_s22, [#allocation6], %s278_s26, %s278_s26, %s279_s27  }
   0x6   :  { %s20_s29 = sshll.u32 %s280_s28, 4  ;;  %s43_s7 = sshll.u32 %s334_s3, 4  ;;  %s21_s29 = int_to_ptr.vmem [resolvable:$true] %s20_s29  ;;  %s44_s7 = int_to_ptr.hbm [resolvable:$true] %s43_s7 }
   0x7   :  { %23 = dma.hbm_to_vmem [thread:$0]  %s19_s25, 128, %s21_s29, [#allocation3]  }
   0x8   :  { %s281_s1 = smov [#allocation7]  }
   0x9   :  { %s45_s8 = sshll.u32 %s281_s1, 4  ;;  %s46_s8 = int_to_ptr.vmem [resolvable:$true] %s45_s8 }
   0xa   :  { %51 = dma.hbm_to_vmem [thread:$0]  %s44_s7, 2048, %s46_s8, [#allocation6], %s278_s26, %s278_s26, %s279_s27  }
   0xb   :  { %271 = dma.done.wait [#allocation3], 128  }
   0xc   :  { %272 = vsyncadd [#allocation3], 4294967168 }
   0xd   :  { %273 = dma.done.wait [#allocation6], 4096  }
   0xe   :  { %274 = vsyncadd [#allocation6], 4294963200  ;;  %v82_v0 = vld [vmem:[#allocation5 + $0x78] sm:$0xff]  ;;  %v81_v1 = vld [vmem:[#allocation5 + $0x70] sm:$0xff]  ;;  %s282_s11 = smov [#allocation8]   ;;  %s156_s15 = sshll.u32 %s336_s5, 4  ;;  %s157_s15 = int_to_ptr.hbm [resolvable:$true] %s156_s15 }
   0xf   :  { %87 = vmatpush.msra.mxu0 %v82_v0  ;;  %v80_v2 = vld [vmem:[#allocation5 + $0x68] sm:$0xff]  ;;  %v79_v3 = vld [vmem:[#allocation5 + $0x60] sm:$0xff]  ;;  %v123_v4 = vld [vmem:[#allocation7 + $0x78] sm:$0xff]  ;;  %s154_s12 = sshll.u32 %s282_s11, 4  ;;  %s155_s12 = int_to_ptr.vmem [resolvable:$true] %s154_s12 }
  0x10   :  { %v78_v5 = vld [vmem:[#allocation5 + $0x58] sm:$0xff]  ;;  %128 = vmatpush.msra.mxu1 %v123_v4  ;;  %v122_v6 = vld [vmem:[#allocation7 + $0x70] sm:$0xff]  ;;  %v121_v7 = vld [vmem:[#allocation7 + $0x68] sm:$0xff] }
  0x11   :  { %88 = vmatpush.msra.mxu0 %v81_v1  ;;  %v77_v8 = vld [vmem:[#allocation5 + $0x50] sm:$0xff]  ;;  %v120_v9 = vld [vmem:[#allocation7 + $0x60] sm:$0xff]  ;;  %v76_v10 = vld [vmem:[#allocation5 + $0x48] sm:$0xff] }
  0x12   :  { %129 = vmatpush.msra.mxu1 %v122_v6  ;;  %v119_v11 = vld [vmem:[#allocation7 + $0x58] sm:$0xff]  ;;  %v75_v12 = vld [vmem:[#allocation5 + $0x40] sm:$0xff]  ;;  %v118_v13 = vld [vmem:[#allocation7 + $0x50] sm:$0xff] }
  0x13   :  { %89 = vmatpush.msra.mxu0 %v80_v2  ;;  %v74_v14 = vld [vmem:[#allocation5 + $0x38] sm:$0xff]  ;;  %v117_v15 = vld [vmem:[#allocation7 + $0x48] sm:$0xff]  ;;  %v73_v16 = vld [vmem:[#allocation5 + $0x30] sm:$0xff] }
  0x14   :  { %130 = vmatpush.msra.mxu1 %v121_v7  ;;  %v116_v17 = vld [vmem:[#allocation7 + $0x40] sm:$0xff]  ;;  %v72_v18 = vld [vmem:[#allocation5 + $0x28] sm:$0xff]  ;;  %v115_v19 = vld [vmem:[#allocation7 + $0x38] sm:$0xff] }
  0x15   :  { %90 = vmatpush.msra.mxu0 %v79_v3  ;;  %v71_v20 = vld [vmem:[#allocation5 + $0x20] sm:$0xff]  ;;  %v114_v21 = vld [vmem:[#allocation7 + $0x30] sm:$0xff]  ;;  %v70_v22 = vld [vmem:[#allocation5 + $0x18] sm:$0xff] }
  0x16   :  { %131 = vmatpush.msra.mxu1 %v120_v9  ;;  %v113_v23 = vld [vmem:[#allocation7 + $0x28] sm:$0xff]  ;;  %v69_v24 = vld [vmem:[#allocation5 + $0x10] sm:$0xff]  ;;  %v112_v25 = vld [vmem:[#allocation7 + $0x20] sm:$0xff] }
  0x17   :  { %91 = vmatpush.msra.mxu0 %v78_v5  ;;  %v68_v26 = vld [vmem:[#allocation5 + $0x8] sm:$0xff]  ;;  %v111_v27 = vld [vmem:[#allocation7 + $0x18] sm:$0xff]  ;;  %v67_v28 = vld [vmem:[#allocation5] sm:$0xff] }
  0x18   :  { %132 = vmatpush.msra.mxu1 %v119_v11  ;;  %v66_v29 = vld [vmem:[#allocation2] sm:$0xff]  ;;  %v110_v30 = vld [vmem:[#allocation7 + $0x10] sm:$0xff]  ;;  %v109_v31 = vld [vmem:[#allocation7 + $0x8] sm:$0xff] }
  0x19   :  { %92 = vmatpush.msra.mxu0 %v77_v8  ;;  %v108_v32 = vld [vmem:[#allocation7] sm:$0xff]  ;;  %v173_v33 = vld [vmem:[%s333_s2] ss:$0 sm:$0xff] }
  0x1a   :  { %133 = vmatpush.msra.mxu1 %v118_v13  ;;  %v174_v37 = vld [vmem:[%s335_s4] ss:$0 sm:$0xff] }
  0x1b   :  { %93 = vmatpush.msra.mxu0 %v76_v10 }
  0x1c   :  { %134 = vmatpush.msra.mxu1 %v117_v15 }
  0x1d   :  { %94 = vmatpush.msra.mxu0 %v75_v12 }
  0x1e   :  { %135 = vmatpush.msra.mxu1 %v116_v17 }
  0x1f   :  { %95 = vmatpush.msra.mxu0 %v74_v14 }
  0x20   :  { %136 = vmatpush.msra.mxu1 %v115_v19 }
  0x21   :  { %96 = vmatpush.msra.mxu0 %v73_v16 }
  0x22   :  { %137 = vmatpush.msra.mxu1 %v114_v21 }
  0x23   :  { %97 = vmatpush.msra.mxu0 %v72_v18 }
  0x24   :  { %138 = vmatpush.msra.mxu1 %v113_v23 }
  0x25   :  { %98 = vmatpush.msra.mxu0 %v71_v20 }
  0x26   :  { %139 = vmatpush.msra.mxu1 %v112_v25 }
  0x27   :  { %99 = vmatpush.msra.mxu0 %v70_v22 }
  0x28   :  { %140 = vmatpush.msra.mxu1 %v111_v27 }
  0x29   :  { %100 = vmatpush.msra.mxu0 %v69_v24 }
  0x2a   :  { %141 = vmatpush.msra.mxu1 %v110_v30 }
  0x2b   :  { %101 = vmatpush.msra.mxu0 %v68_v26 }
  0x2c   :  { %142 = vmatpush.msra.mxu1 %v109_v31 }
  0x2d   :  { %102 = vmatpush.msra.mxu0 %v67_v28 }
  0x2e   :  { %103 = vmatmul.f32.vlgmr.msra.gmra.mxu0 %v66_v29  ;;  %143 = vmatpush.msra.mxu1 %v108_v32 }
  0xab   :  { %v104_v34 = vpop.f32.mrf.mxu0 }
  0xac   :  { %v105_v35 = vadd.f32 %v173_v33, %v104_v34 }
  0xae   :  { %v107_v36 = vmax.f32 %v105_v35, 0.0 }
  0xb0   :  { %144 = vmatmul.f32.vlgmr.msra.gmra.mxu1 %v107_v36 }
 0x12d   :  { %v145_v38 = vpop.f32.mrf.mxu1 }
 0x12e   :  { %v146_v39 = vadd.f32 %v174_v37, %v145_v38 }
 0x130   :  { %148 = vst [vmem:[#allocation8] sm:$0xff] %v146_v39 }
 0x131   :  { %159 = dma.vmem_to_hbm [thread:$0]  %s155_s12, 128, %s157_s15, [#allocation4]  }
 0x132   :  { %275 = dma.done.wait [#allocation4], 128  }
 0x133   :  { %276 = vsyncadd [#allocation4], 4294967168 }
 0x134   :  { %164 = vsyncpa [#allocation3], 1 }
 0x135   :  { %165 = vsyncpa [#allocation6], 1 }
 0x136   :  { %166 = vsyncpa [#allocation4], 1 }

</bundles_post_ra>
